<compile_context>
chip_gen: v5e
topology: v5e:2x2
jax: 0.10.0
libtpu: 0.0.40
codegen_flags: <defaults>
</compile_context>

<pallas_src>
import jax
import jax.numpy as jnp
from jax.experimental import pallas as pl
from jax.experimental.pallas import tpu as pltpu

DROPOUT_P = 0.0

_VMEM_LIMIT_BYTES = 48 * 1024 * 1024    # explicit scoped-VMEM limit (safe on v7x's 64 MiB/TC)
_VMEM_BUDGET_BYTES = 40 * 1024 * 1024   # target buffer footprint (headroom for compiler scratch)
_TS_CAP = 1024                          # diminishing HBM-roofline returns beyond this
_LANE = 128


def _round_up(x, m):
    return -(-x // m) * m


def _choose_tile_rows(S, K, N_pad, m_itemsize, v_itemsize, out_itemsize, single_bh):
    """Largest sublane-aligned S-tile that fits the VMEM buffer budget."""
    row_align = {4: 8, 2: 16, 1: 32}.get(int(m_itemsize), 8)
    if S <= row_align:
        return S
    per_row = (2 * K * m_itemsize          # mask tile, double-buffered
               + 3 * K * 4                 # f32 softmax intermediates (logits, e) + slack
               + K * 2                     # bf16 matmul copy of e
               + 2 * N_pad * out_itemsize  # output tile, double-buffered
               + N_pad * 4)                # f32 accumulator
    fixed = 2 * K * N_pad * v_itemsize     # v block (budgeted as if double-buffered)
    avail = max(_VMEM_BUDGET_BYTES - fixed, per_row * row_align)
    ts = (avail // per_row) // row_align * row_align
    ts = int(max(row_align, min(ts, _TS_CAP)))
    if single_bh:
        # v7x has 2 TensorCores: keep >= 2 S-tiles when (B, H) give no parallelism.
        half = _round_up((S + 1) // 2, row_align)
        ts = min(ts, max(row_align, half))
    return S if ts >= S else ts


def _make_kernel(dropout_p):
    def kernel(*refs):
        if dropout_p > 0.0:
            seed_ref, mask_ref, v_ref, out_ref = refs
        else:
            mask_ref, v_ref, out_ref = refs

        # Row softmax over K, numerics in f32 regardless of input dtype.
        logits = mask_ref[0, 0].astype(jnp.float32)          # (TS, K)
        logits = logits - jnp.max(logits, axis=-1, keepdims=True)
        e = jnp.exp(logits)
        inv = pl.reciprocal(jnp.sum(e, axis=-1, keepdims=True),
                            approx=True)                      # (TS, 1), EUP slot

        v = v_ref[0, 0]                                       # (K, N_pad)
        e_mat = e.astype(v.dtype)                             # bf16 when wrapper cast v

        if dropout_p > 0.0:
            # F.dropout(training=True): drop w.p. p; keep mask via integer
            # threshold compare (no float convert / float compare chain).
            tile_id = (pl.program_id(0) * pl.num_programs(1)
                       + pl.program_id(1)) * pl.num_programs(2) + pl.program_id(2)
            pltpu.prng_seed(seed_ref[0] + tile_id)
            bits = pltpu.bitcast(pltpu.prng_random_bits(e.shape), jnp.uint32)
            threshold = jnp.uint32(min(int(dropout_p * (1 << 32)), (1 << 32) - 1))
            keep = (bits >= threshold).astype(e_mat.dtype)     # P(keep) = 1 - p
            e_mat = e_mat * keep
            inv = inv * jnp.float32(1.0 / (1.0 - dropout_p))

        # Un-normalized matmul on the MXU (f32 accumulation); fold the softmax
        # normalization (and dropout scale) into one per-row multiply on the
        # small (TS, N_pad) output tile instead of the (TS, K) tile.
        acc = jnp.dot(e_mat, v, preferred_element_type=jnp.float32)
        out_ref[0, 0] = (acc * inv).astype(out_ref.dtype)

    return kernel


def model_forward(attention_mask, att_output, seed=0):
    """Pallas equivalent of Model.forward(attention_mask, att_output)."""
    attention_mask = jnp.asarray(attention_mask)
    att_output = jnp.asarray(att_output)

    batch_shape = jnp.broadcast_shapes(attention_mask.shape[:-2],
                                       att_output.shape[:-2])
    S, K = attention_mask.shape[-2:]
    K2, N = att_output.shape[-2:]
    assert K == K2, "inner dims must match for matmul"
    out_dtype = jnp.result_type(attention_mask.dtype, att_output.dtype)

    # Normalize both operands to 4-D without materializing any broadcast.
    m4 = (attention_mask.reshape((1,) * (4 - attention_mask.ndim)
                                 + attention_mask.shape)
          if attention_mask.ndim < 4 else attention_mask)
    v4 = (att_output.reshape((1,) * (4 - att_output.ndim) + att_output.shape)
          if att_output.ndim < 4 else att_output)
    assert m4.ndim == 4 and v4.ndim == 4, "only <=2 leading batch dims handled"

    Bm, Hm = m4.shape[:2]
    Bv, Hv = v4.shape[:2]
    B, H = max(Bm, Bv), max(Hm, Hv)

    # Precision policy: run the MXU in bf16 for f32 inputs (f32 accumulation).
    if v4.dtype == jnp.float32:
        v4 = v4.astype(jnp.bfloat16)

    # Lane-dense output padding only when N is large enough to pay for it.
    if N >= 64 and N % _LANE != 0:
        N_pad = _round_up(N, _LANE)
        v4 = jnp.pad(v4, ((0, 0), (0, 0), (0, 0), (0, N_pad - N)))
    else:
        N_pad = N

    TS = _choose_tile_rows(S, K, N_pad,
                           m4.dtype.itemsize, v4.dtype.itemsize,
                           jnp.dtype(out_dtype).itemsize,
                           single_bh=(B * H == 1))

    # index_maps return block 0 along any operand axis that is broadcast.
    mask_spec = pl.BlockSpec(
        (1, 1, TS, K),
        lambda b, h, s, *_: (b if Bm > 1 else 0, h if Hm > 1 else 0, s, 0))
    out_spec = pl.BlockSpec((1, 1, TS, N_pad), lambda b, h, s, *_: (b, h, s, 0))

    def v_index_map(b, h, s, *_):
        return (b if Bv > 1 else 0, h if Hv > 1 else 0, 0, 0)

    grid = (B, H, pl.cdiv(S, TS))          # ragged last S tile handled by Pallas
    num_prefetch = 1 if DROPOUT_P > 0.0 else 0

    def run(v_single_buffered):
        # The v block index is invariant along s (and broadcast b/h), so a
        # single buffer suffices and halves its VMEM footprint.
        if v_single_buffered:
            v_spec = pl.BlockSpec((1, 1, K, N_pad), v_index_map,
                                  pipeline_mode=pl.Buffered(1))
        else:
            v_spec = pl.BlockSpec((1, 1, K, N_pad), v_index_map)
        call = pl.pallas_call(
            _make_kernel(DROPOUT_P),
            out_shape=jax.ShapeDtypeStruct((B, H, S, N_pad), out_dtype),
            grid_spec=pltpu.PrefetchScalarGridSpec(
                num_scalar_prefetch=num_prefetch,
                grid=grid,
                in_specs=[mask_spec, v_spec],
                out_specs=out_spec,
            ),
            compiler_params=pltpu.CompilerParams(
                dimension_semantics=("parallel", "parallel", "parallel"),
                vmem_limit_bytes=_VMEM_LIMIT_BYTES,
            ),
        )
        if num_prefetch:
            return call(jnp.array([seed], dtype=jnp.int32), m4, v4)
        return call(m4, v4)

    try:
        out4 = run(v_single_buffered=True)
    except Exception:
        # pl.Buffered(1) not supported by this jax/libtpu combo: fall back to
        # the default double-buffered v block (correctness identical).
        out4 = run(v_single_buffered=False)

    if N_pad != N:
        out4 = out4[..., :N]
    return out4.reshape(batch_shape + (S, N))


if __name__ == "__main__":
    key = jax.random.PRNGKey(0)
    k1, k2 = jax.random.split(key)

    # The module's `scale_factor` parameter exists but is unused in forward.
    scale_factor = jnp.ones((1, 1, 1), dtype=jnp.float32)

    # Small shapes consistent with the module's forward (att_output is
    # (1, 1, 100, 5) in the original source, so the mask's last dim is 100).
    attention_mask = jax.random.normal(k1, (1, 1, 8, 100), dtype=jnp.float32)
    att_output = jax.random.normal(k2, (1, 1, 100, 5), dtype=jnp.float32)

    out = model_forward(attention_mask, att_output)
    out = jax.block_until_ready(out)

    # Reference (dropout_p == 0 so forward is deterministic).  Tolerance
    # reflects the kernel's precision policy: bf16 MXU matmul with f32
    # accumulation + EUP approximate reciprocal for the softmax denominator.
    ref = jnp.matmul(jax.nn.softmax(attention_mask, axis=-1), att_output)
    assert out.shape == ref.shape, (out.shape, ref.shape)
    assert jnp.allclose(out, ref, atol=2e-2, rtol=2e-2), float(
        jnp.max(jnp.abs(out - ref)))

    print("KERNEL_OK")
</pallas_src>

<mosaic_0001>
module attributes {stable_mosaic.version = 11 : i64} {
  func.func @kernel(%arg0: i32, %arg1: i32, %arg2: i32, %arg3: memref<1x1x8x100xf32, #tpu.memory_space<vmem>>, %arg4: memref<1x1x100x5xbf16, #tpu.memory_space<vmem>>, %arg5: memref<1x1x8x5xf32, #tpu.memory_space<vmem>>) attributes {dimension_semantics = [#tpu.dimension_semantics<parallel>, #tpu.dimension_semantics<parallel>, #tpu.dimension_semantics<parallel>], iteration_bounds = array<i64: 1, 1, 1>, scalar_prefetch = 0 : i64, scratch_operands = 0 : i64, tpu.core_type = #tpu.core_type<tc>, window_params = [{transform_indices = @transform_0, window_bounds = array<i64: 1, 1, 8, 100>}, {pipeline_mode = #tpu.pipeline_mode<synchronous>, transform_indices = @transform_1, window_bounds = array<i64: 1, 1, 100, 5>}, {transform_indices = @transform_2, window_bounds = array<i64: 1, 1, 8, 5>}]} {
    %c0 = arith.constant 0 : index
    %c0_0 = arith.constant 0 : index
    %c0_1 = arith.constant 0 : index
    %c0_2 = arith.constant 0 : index
    %0 = vector.load %arg3[%c0, %c0_0, %c0_1, %c0_2] : memref<1x1x8x100xf32, #tpu.memory_space<vmem>>, vector<1x1x8x100xf32>
    %1 = vector.shape_cast %0 : vector<1x1x8x100xf32> to vector<8x100xf32>
    %cst = arith.constant dense<0xFF800000> : vector<8xf32>
    %2 = vector.multi_reduction <maximumf>, %1, %cst [1] : vector<8x100xf32> to vector<8xf32>
    %3 = vector.shape_cast %2 : vector<8xf32> to vector<8x1xf32>
    %4 = vector.broadcast %3 : vector<8x1xf32> to vector<8x100xf32>
    %5 = arith.subf %1, %4 : vector<8x100xf32>
    %6 = math.exp %5 : vector<8x100xf32>
    %cst_3 = arith.constant dense<0.000000e+00> : vector<8xf32>
    %7 = vector.multi_reduction <add>, %6, %cst_3 [1] : vector<8x100xf32> to vector<8xf32>
    %8 = vector.shape_cast %7 : vector<8xf32> to vector<8x1xf32>
    %9 = tpu.reciprocal %8 {approx = true} : vector<8x1xf32> -> vector<8x1xf32>
    %c0_4 = arith.constant 0 : index
    %c0_5 = arith.constant 0 : index
    %c0_6 = arith.constant 0 : index
    %c0_7 = arith.constant 0 : index
    %10 = vector.load %arg4[%c0_4, %c0_5, %c0_6, %c0_7] : memref<1x1x100x5xbf16, #tpu.memory_space<vmem>>, vector<1x1x100x5xbf16>
    %11 = vector.shape_cast %10 : vector<1x1x100x5xbf16> to vector<100x5xbf16>
    %12 = arith.truncf %6 : vector<8x100xf32> to vector<8x100xbf16>
    %cst_8 = arith.constant dense<0.000000e+00> : vector<8x5xf32>
    %13 = tpu.matmul %12, %11, %cst_8 {dimension_numbers = #tpu.dot_dimension_numbers<[1], [0], [0], [1], [0, 0, 1, 1], [], []>} : vector<8x100xbf16>, vector<100x5xbf16>, vector<8x5xf32> -> vector<8x5xf32>
    %14 = vector.broadcast %9 : vector<8x1xf32> to vector<8x5xf32>
    %15 = arith.mulf %13, %14 : vector<8x5xf32>
    %c0_9 = arith.constant 0 : index
    %c0_10 = arith.constant 0 : index
    %c0_11 = arith.constant 0 : index
    %c0_12 = arith.constant 0 : index
    %16 = vector.load %arg5[%c0_9, %c0_10, %c0_11, %c0_12] : memref<1x1x8x5xf32, #tpu.memory_space<vmem>>, vector<1x1x8x5xf32>
    %17 = vector.shape_cast %16 : vector<1x1x8x5xf32> to vector<8x5xf32>
    %18 = vector.shape_cast %15 : vector<8x5xf32> to vector<1x1x8x5xf32>
    tpu.vector_store %arg5[%c0_9, %c0_10, %c0_11, %c0_12], %18 {strides = array<i32>} : memref<1x1x8x5xf32, #tpu.memory_space<vmem>>, vector<1x1x8x5xf32>,
    return
  }
  func.func @transform_0(%arg0: i32, %arg1: i32, %arg2: i32) -> (i32, i32, i32, i32) {
    %c0_i32 = arith.constant 0 : i32
    %c0_i32_0 = arith.constant 0 : i32
    %c0_i32_1 = arith.constant 0 : i32
    %c0_i32_2 = arith.constant 0 : i32
    return %c0_i32, %c0_i32_0, %arg2, %c0_i32_1 : i32, i32, i32, i32
  }
  func.func @transform_1(%arg0: i32, %arg1: i32, %arg2: i32) -> (i32, i32, i32, i32) {
    %c0_i32 = arith.constant 0 : i32
    %c0_i32_0 = arith.constant 0 : i32
    %c0_i32_1 = arith.constant 0 : i32
    %c0_i32_2 = arith.constant 0 : i32
    %c0_i32_3 = arith.constant 0 : i32
    return %c0_i32, %c0_i32_0, %c0_i32_1, %c0_i32_2 : i32, i32, i32, i32
  }
  func.func @transform_2(%arg0: i32, %arg1: i32, %arg2: i32) -> (i32, i32, i32, i32) {
    %c0_i32 = arith.constant 0 : i32
    %c0_i32_0 = arith.constant 0 : i32
    return %arg0, %arg1, %arg2, %c0_i32 : i32, i32, i32, i32
  }
}

module attributes {stable_mosaic.version = 11 : i64} {
  func.func @kernel(%arg0: i32, %arg1: i32, %arg2: i32, %arg3: memref<1x1x8x100xf32, #tpu.memory_space<vmem>>, %arg4: memref<1x1x100x5xbf16, #tpu.memory_space<vmem>>, %arg5: memref<1x1x8x5xf32, #tpu.memory_space<vmem>>) attributes {dimension_semantics = [#tpu.dimension_semantics<parallel>, #tpu.dimension_semantics<parallel>, #tpu.dimension_semantics<parallel>], iteration_bounds = array<i64: 1, 1, 1>, scalar_prefetch = 0 : i64, scratch_operands = 0 : i64, tpu.core_type = #tpu.core_type<tc>, window_params = [{transform_indices = @transform_0, window_bounds = array<i64: 1, 1, 8, 100>}, {pipeline_mode = #tpu.pipeline_mode<synchronous>, transform_indices = @transform_1, window_bounds = array<i64: 1, 1, 100, 5>}, {transform_indices = @transform_2, window_bounds = array<i64: 1, 1, 8, 5>}]} {
    %c0 = arith.constant 0 : index
    %c0_0 = arith.constant 0 : index
    %c0_1 = arith.constant 0 : index
    %c0_2 = arith.constant 0 : index
    %0 = vector.load %arg3[%c0, %c0_0, %c0_1, %c0_2] : memref<1x1x8x100xf32, #tpu.memory_space<vmem>>, vector<1x1x8x100xf32>
    %1 = vector.shape_cast %0 : vector<1x1x8x100xf32> to vector<8x100xf32>
    %cst = arith.constant dense<0xFF800000> : vector<8xf32>
    %2 = vector.multi_reduction <maximumf>, %1, %cst [1] : vector<8x100xf32> to vector<8xf32>
    %3 = vector.shape_cast %2 : vector<8xf32> to vector<8x1xf32>
    %4 = vector.broadcast %3 : vector<8x1xf32> to vector<8x100xf32>
    %5 = arith.subf %1, %4 : vector<8x100xf32>
    %6 = math.exp %5 : vector<8x100xf32>
    %cst_3 = arith.constant dense<0.000000e+00> : vector<8xf32>
    %7 = vector.multi_reduction <add>, %6, %cst_3 [1] : vector<8x100xf32> to vector<8xf32>
    %8 = vector.shape_cast %7 : vector<8xf32> to vector<8x1xf32>
    %9 = tpu.reciprocal %8 {approx = true} : vector<8x1xf32> -> vector<8x1xf32>
    %c0_4 = arith.constant 0 : index
    %c0_5 = arith.constant 0 : index
    %c0_6 = arith.constant 0 : index
    %c0_7 = arith.constant 0 : index
    %10 = vector.load %arg4[%c0_4, %c0_5, %c0_6, %c0_7] : memref<1x1x100x5xbf16, #tpu.memory_space<vmem>>, vector<1x1x100x5xbf16>
    %11 = vector.shape_cast %10 : vector<1x1x100x5xbf16> to vector<100x5xbf16>
    %12 = arith.truncf %6 : vector<8x100xf32> to vector<8x100xbf16>
    %cst_8 = arith.constant dense<0.000000e+00> : vector<8x5xf32>
    %13 = tpu.matmul %12, %11, %cst_8 {dimension_numbers = #tpu.dot_dimension_numbers<[1], [0], [0], [1], [0, 0, 1, 1], [], []>} : vector<8x100xbf16>, vector<100x5xbf16>, vector<8x5xf32> -> vector<8x5xf32>
    %14 = vector.broadcast %9 : vector<8x1xf32> to vector<8x5xf32>
    %15 = arith.mulf %13, %14 : vector<8x5xf32>
    %c0_9 = arith.constant 0 : index
    %c0_10 = arith.constant 0 : index
    %c0_11 = arith.constant 0 : index
    %c0_12 = arith.constant 0 : index
    %16 = vector.load %arg5[%c0_9, %c0_10, %c0_11, %c0_12] : memref<1x1x8x5xf32, #tpu.memory_space<vmem>>, vector<1x1x8x5xf32>
    %17 = vector.shape_cast %16 : vector<1x1x8x5xf32> to vector<8x5xf32>
    %18 = vector.shape_cast %15 : vector<8x5xf32> to vector<1x1x8x5xf32>
    tpu.vector_store %arg5[%c0_9, %c0_10, %c0_11, %c0_12], %18 {strides = array<i32>} : memref<1x1x8x5xf32, #tpu.memory_space<vmem>>, vector<1x1x8x5xf32>,
    return
  }
  func.func @transform_0(%arg0: i32, %arg1: i32, %arg2: i32) -> (i32, i32, i32, i32) {
    %c0_i32 = arith.constant 0 : i32
    %c0_i32_0 = arith.constant 0 : i32
    %c0_i32_1 = arith.constant 0 : i32
    %c0_i32_2 = arith.constant 0 : i32
    return %c0_i32, %c0_i32_0, %arg2, %c0_i32_1 : i32, i32, i32, i32
  }
  func.func @transform_1(%arg0: i32, %arg1: i32, %arg2: i32) -> (i32, i32, i32, i32) {
    %c0_i32 = arith.constant 0 : i32
    %c0_i32_0 = arith.constant 0 : i32
    %c0_i32_1 = arith.constant 0 : i32
    %c0_i32_2 = arith.constant 0 : i32
    %c0_i32_3 = arith.constant 0 : i32
    return %c0_i32, %c0_i32_0, %c0_i32_1, %c0_i32_2 : i32, i32, i32, i32
  }
  func.func @transform_2(%arg0: i32, %arg1: i32, %arg2: i32) -> (i32, i32, i32, i32) {
    %c0_i32 = arith.constant 0 : i32
    %c0_i32_0 = arith.constant 0 : i32
    return %arg0, %arg1, %arg2, %c0_i32 : i32, i32, i32, i32
  }
}

</mosaic_0001>

<bundles_post_ra>
// kernel: tpu_custom_call.1
= control target key start
LH: loop header
LB: loop body
LE: loop exit
PB: predicated region body
PF: predicated region fallthrough
CT: control target
= control target key end

     0   :  { %vm13_vm0 = vcmask 818176   ;;  %vm80_vm1 = vcmask 1041408   ;;  %vm98_vm2 = vcmask 39936   ;;  %s184_s0 = inlined_call_operand.vmem [shape: f32[1,1,8,100], index: 0, kind: input, shape index: {}]   ;;  %s185_s1 = inlined_call_operand.vmem [shape: bf16[1,1,100,5], index: 1, kind: input, shape index: {}]   ;;  %s186_s2 = inlined_call_operand.vmem [shape: f32[1,1,8,5], index: 2, kind: output, shape index: {}]  }
   0x1   :  { %v12_v0 = vld [vmem:[%s184_s0] sm:$0xff]  ;;  %v36_v1 = vld [vmem:[%s185_s1 + $0x30] sm:$0x3]  ;;  %v134_v6 = vld [vmem:[%s185_s1 + $0x28] sm:$0xff] }
   0x2   :  { %v14_v2 = vsel %vm13_vm0, %v12_v0, -inf  ;;  %v63_v3 = vunpack.c.l.b16 %v36_v1  ;;  %v133_v7 = vld [vmem:[%s185_s1 + $0x20] sm:$0xff]  ;;  %v132_v8 = vld [vmem:[%s185_s1 + $0x18] sm:$0xff]  ;;  %v131_v9 = vld [vmem:[%s185_s1 + $0x10] sm:$0xff] }
   0x3   :  { %15 = vmax.xlane.f32.xlu0 %v14_v2  ;;  %v130_v10 = vld [vmem:[%s185_s1 + $0x8] sm:$0xff]  ;;  %v129_v11 = vld [vmem:[%s185_s1] sm:$0xff] }
   0x4   :  { %v70_v4 = vpack.c.b16 %v63_v3, %v63_v3 }
   0x6   :  { %v82_v5 = vsel %vm80_vm1, %v70_v4, 0 }
   0x7   :  { %85 = vmatpush.bf16.msra.mxu0 %v82_v5 }
   0xb   :  { %86 = vmatpush.bf16.msra.mxu0 %v134_v6 }
   0xf   :  { %87 = vmatpush.bf16.msra.mxu0 %v133_v7 }
  0x13   :  { %88 = vmatpush.bf16.msra.mxu0 %v132_v8 }
  0x17   :  { %89 = vmatpush.bf16.msra.mxu0 %v131_v9 }
  0x1b   :  { %90 = vmatpush.bf16.msra.mxu0 %v130_v10 }
  0x1f   :  { %91 = vmatpush.bf16.msra.mxu0 %v129_v11 }
  0x76   :  { %v16_v12 = vpop.xlane.xlu0 %15 }
  0x77   :  { %v17_v13 = vsub.f32 %v12_v0, %v16_v12 }
  0x79   :  { %v18_v14 = vmul.f32 1.442695, %v17_v13 }
  0x7b   :  { %135 = vpow2.f32 %v18_v14 }
  0x81   :  { %v136_v15 = vpop.eup %135 }
  0x82   :  { %v20_v16 = vsel %vm13_vm0, %v136_v15, 0.0  ;;  %v37_v17 = vpack.c.bf16 %v136_v15, %v136_v15 }
  0x83   :  { %21 = vadd.xlane.f32.xlu0 %v20_v16 }
  0x84   :  { %128 = vmatmul.msk.bf16.vlgmr.msra.gmra.mxu0 %vm13_vm0, %v37_v17 }
  0xf6   :  { %v22_v18 = vpop.xlane.xlu0 %21 }
  0xf7   :  { %137 = vrcp.f32 %v22_v18 }
  0xfd   :  { %v138_v19 = vpop.eup %137 }
 0x101   :  { %v93_v20 = vpop.f32.mrf.mxu0 }
 0x102   :  { %v97_v21 = vmul.f32 %v138_v19, %v93_v20 }
 0x104   :  { %99 = vst.msk [vmem:[%s186_s2] sm:$0xff] %vm98_vm2, %v97_v21 }
 0x109   :  { %v95_v22 = vpop.f32.mrf.mxu0 }

// kernel: tpu_custom_call.1
= control target key start
LH: loop header
LB: loop body
LE: loop exit
PB: predicated region body
PF: predicated region fallthrough
CT: control target
= control target key end

     0   :  { %vm13_vm0 = vcmask 818176   ;;  %vm80_vm1 = vcmask 1041408   ;;  %vm98_vm2 = vcmask 39936   ;;  %s184_s0 = inlined_call_operand.vmem [shape: f32[1,1,8,100], index: 0, kind: input, shape index: {}]   ;;  %s185_s1 = inlined_call_operand.vmem [shape: bf16[1,1,100,5], index: 1, kind: input, shape index: {}]   ;;  %s186_s2 = inlined_call_operand.vmem [shape: f32[1,1,8,5], index: 2, kind: output, shape index: {}]  }
   0x1   :  { %v12_v0 = vld [vmem:[%s184_s0] sm:$0xff]  ;;  %v36_v1 = vld [vmem:[%s185_s1 + $0x30] sm:$0x3]  ;;  %v134_v6 = vld [vmem:[%s185_s1 + $0x28] sm:$0xff] }
   0x2   :  { %v14_v2 = vsel %vm13_vm0, %v12_v0, -inf  ;;  %v63_v3 = vunpack.c.l.b16 %v36_v1  ;;  %v133_v7 = vld [vmem:[%s185_s1 + $0x20] sm:$0xff]  ;;  %v132_v8 = vld [vmem:[%s185_s1 + $0x18] sm:$0xff]  ;;  %v131_v9 = vld [vmem:[%s185_s1 + $0x10] sm:$0xff] }
   0x3   :  { %15 = vmax.xlane.f32.xlu0 %v14_v2  ;;  %v130_v10 = vld [vmem:[%s185_s1 + $0x8] sm:$0xff]  ;;  %v129_v11 = vld [vmem:[%s185_s1] sm:$0xff] }
   0x4   :  { %v70_v4 = vpack.c.b16 %v63_v3, %v63_v3 }
   0x6   :  { %v82_v5 = vsel %vm80_vm1, %v70_v4, 0 }
   0x7   :  { %85 = vmatpush.bf16.msra.mxu0 %v82_v5 }
   0xb   :  { %86 = vmatpush.bf16.msra.mxu0 %v134_v6 }
   0xf   :  { %87 = vmatpush.bf16.msra.mxu0 %v133_v7 }
  0x13   :  { %88 = vmatpush.bf16.msra.mxu0 %v132_v8 }
  0x17   :  { %89 = vmatpush.bf16.msra.mxu0 %v131_v9 }
  0x1b   :  { %90 = vmatpush.bf16.msra.mxu0 %v130_v10 }
  0x1f   :  { %91 = vmatpush.bf16.msra.mxu0 %v129_v11 }
  0x76   :  { %v16_v12 = vpop.xlane.xlu0 %15 }
  0x77   :  { %v17_v13 = vsub.f32 %v12_v0, %v16_v12 }
  0x79   :  { %v18_v14 = vmul.f32 1.442695, %v17_v13 }
  0x7b   :  { %135 = vpow2.f32 %v18_v14 }
  0x81   :  { %v136_v15 = vpop.eup %135 }
  0x82   :  { %v20_v16 = vsel %vm13_vm0, %v136_v15, 0.0  ;;  %v37_v17 = vpack.c.bf16 %v136_v15, %v136_v15 }
  0x83   :  { %21 = vadd.xlane.f32.xlu0 %v20_v16 }
  0x84   :  { %128 = vmatmul.msk.bf16.vlgmr.msra.gmra.mxu0 %vm13_vm0, %v37_v17 }
  0xf6   :  { %v22_v18 = vpop.xlane.xlu0 %21 }
  0xf7   :  { %137 = vrcp.f32 %v22_v18 }
  0xfd   :  { %v138_v19 = vpop.eup %137 }
 0x101   :  { %v93_v20 = vpop.f32.mrf.mxu0 }
 0x102   :  { %v97_v21 = vmul.f32 %v138_v19, %v93_v20 }
 0x104   :  { %99 = vst.msk [vmem:[%s186_s2] sm:$0xff] %vm98_vm2, %v97_v21 }
 0x109   :  { %v95_v22 = vpop.f32.mrf.mxu0 }

</bundles_post_ra>
